<compile_context>
chip_gen: v5e
topology: v5e:2x2
jax: 0.10.0
libtpu: 0.0.40
codegen_flags: <defaults>
</compile_context>

<pallas_src>
import functools

import jax
import jax.numpy as jnp
from jax.experimental import pallas as pl
from jax.experimental.pallas import tpu as pltpu


# ---------------------------------------------------------------------------
# Pallas kernel
# ---------------------------------------------------------------------------

def _conv_bn_kernel(x_ref, w_ref, g_ref, b_ref, o_ref, *, width, relu, eps):
    """Fused 3x3 conv (pad=1, stride=1, no bias) + BatchNorm2d + activation.

    x_ref: [N, Cin, H*W]     flattened NCHW input (lane axis = H*W)
    w_ref: [Cout, 9*Cin]     repacked conv weight, k = (dy*3+dx)*Cin + ci
    g_ref: [Cout, 1]         BatchNorm gamma
    b_ref: [Cout, 1]         BatchNorm beta
    o_ref: [N, Cout, H*W]    lane-dense output (reshaped to NCHW by the wrapper)
    """
    N, Cin, HW = x_ref.shape
    W = width
    P = W + 1                      # flat halo pad (one full row + one column)

    # Column index of every output pixel -> masks for horizontally-OOB taps.
    col = jax.lax.broadcasted_iota(jnp.int32, (1, HW), 1) % W
    not_left = col != 0            # tap dx=0 reads w-1: invalid where w == 0
    not_right = col != (W - 1)     # tap dx=2 reads w+1: invalid where w == W-1

    zpad = jnp.zeros((Cin, P), x_ref.dtype)

    # Build the im2col matrix (9*Cin, N*H*W) entirely in VMEM registers.
    cols = []
    for n in range(N):                                   # static unroll (small N)
        xn = x_ref[n]                                    # (Cin, HW)
        xpn = jnp.concatenate([zpad, xn, zpad], axis=1)  # (Cin, HW + 2P)
        taps = []
        for dy in range(3):
            for dx in range(3):
                s = (dy - 1) * W + (dx - 1)              # flat shift of this tap
                t = xpn[:, P + s: P + s + HW]            # (Cin, HW) lane shift
                if dx == 0:
                    t = jnp.where(not_left, t, 0.0)
                elif dx == 2:
                    t = jnp.where(not_right, t, 0.0)
                taps.append(t)
        cols.append(jnp.concatenate(taps, axis=0))       # (9*Cin, HW)
    patch = jnp.concatenate(cols, axis=1)                # (9*Cin, N*HW)

    # Single K = 9*Cin MXU contraction; lanes = N*H*W (lane-dense).
    y = jnp.dot(w_ref[...], patch,
                preferred_element_type=jnp.float32)      # (Cout, N*HW)

    # BatchNorm2d, training-mode forward: per-channel batch mean / biased
    # variance over (N, H, W) == the lane axis here.
    mean = jnp.mean(y, axis=1, keepdims=True)
    var = jnp.mean((y - mean) * (y - mean), axis=1, keepdims=True)
    out = (y - mean) * jax.lax.rsqrt(var + eps) * g_ref[...] + b_ref[...]

    if relu:
        out = jnp.maximum(out, 0.0)
    # activation=None -> Identity (default)

    # Unmasked lane-dense stores: each slab is HW lanes (multiple of 128).
    for n in range(N):
        o_ref[n] = out[:, n * HW:(n + 1) * HW]


_VMEM_SPEC = pl.BlockSpec(memory_space=pltpu.MemorySpace.VMEM)


# ---------------------------------------------------------------------------
# JAX wrapper (PyTorch-facing: NCHW in, NCHW out)
# ---------------------------------------------------------------------------

def conv_block(x_nchw, weight, gamma, beta, *, activation=None, eps=1e-5):
    """ConvBlock forward: Conv2d(3x3, pad=1, stride=1, bias=False) + BN + act."""
    N, Cin, H, W = x_nchw.shape
    Cout, Cin_w, kh, kw = weight.shape
    assert Cin_w == Cin and kh == 3 and kw == 3, "only k=3 supported"
    assert activation in (None, "ReLU"), "only Identity / ReLU supported"

    # Free host-side reshape (no data movement): lane axis becomes H*W.
    x_flat = x_nchw.reshape(N, Cin, H * W)
    # One-time weight repack: [Cout, Cin, 3, 3] -> [Cout, 9*Cin],
    # column index k = (dy*3 + dx)*Cin + ci  (matches the kernel's tap order).
    w2d = jnp.transpose(weight, (0, 2, 3, 1)).reshape(Cout, 9 * Cin)
    g2d = gamma.reshape(Cout, 1).astype(jnp.float32)
    b2d = beta.reshape(Cout, 1).astype(jnp.float32)

    kernel = functools.partial(_conv_bn_kernel, width=W,
                               relu=(activation == "ReLU"), eps=eps)
    out = pl.pallas_call(
        kernel,
        out_shape=jax.ShapeDtypeStruct((N, Cout, H * W), jnp.float32),
        in_specs=[_VMEM_SPEC] * 4,
        out_specs=_VMEM_SPEC,
    )(x_flat.astype(jnp.float32), w2d.astype(jnp.float32), g2d, b2d)

    return out.reshape(N, Cout, H, W)


# ---------------------------------------------------------------------------
# Pure-JAX reference (for the correctness check)
# ---------------------------------------------------------------------------

def _reference(x, weight, gamma, beta, eps=1e-5):
    y = jax.lax.conv_general_dilated(
        x, weight, window_strides=(1, 1), padding=((1, 1), (1, 1)),
        dimension_numbers=("NCHW", "OIHW", "NCHW"),
        precision=jax.lax.Precision.HIGHEST)
    m = jnp.mean(y, axis=(0, 2, 3), keepdims=True)
    v = jnp.mean((y - m) ** 2, axis=(0, 2, 3), keepdims=True)
    return ((y - m) * jax.lax.rsqrt(v + eps) * gamma.reshape(1, -1, 1, 1)
            + beta.reshape(1, -1, 1, 1))


# ---------------------------------------------------------------------------
# Main
# ---------------------------------------------------------------------------

if __name__ == "__main__":
    IN_C, OUT_C = 8, 16
    N, H, W = 2, 16, 16

    key = jax.random.PRNGKey(0)
    ks = jax.random.split(key, 4)

    weight = 0.1 * jax.random.normal(ks[0], (OUT_C, IN_C, 3, 3), jnp.float32)
    gamma = 1.0 + 0.1 * jax.random.normal(ks[1], (OUT_C,), jnp.float32)
    beta = 0.1 * jax.random.normal(ks[2], (OUT_C,), jnp.float32)
    x = jax.random.normal(ks[3], (N, IN_C, H, W), jnp.float32)   # NCHW

    out = jax.block_until_ready(jax.jit(conv_block)(x, weight, gamma, beta))
    assert out.shape == (N, OUT_C, H, W), out.shape

    ref = jax.block_until_ready(_reference(x, weight, gamma, beta))
    err = float(jnp.max(jnp.abs(out - ref)))
    assert jnp.allclose(out, ref, atol=1e-2, rtol=1e-2), err

    print("KERNEL_OK")
</pallas_src>

<mosaic_0001>
module attributes {stable_mosaic.version = 11 : i64} {
  func.func @_conv_bn_kernel(%arg0: memref<2x8x256xf32, #tpu.memory_space<vmem>>, %arg1: memref<16x72xf32, #tpu.memory_space<vmem>>, %arg2: memref<16x1xf32, #tpu.memory_space<vmem>>, %arg3: memref<16x1xf32, #tpu.memory_space<vmem>>, %arg4: memref<2x16x256xf32, #tpu.memory_space<vmem>>) attributes {dimension_semantics = [], scalar_prefetch = 0 : i64, scratch_operands = 0 : i64, tpu.core_type = #tpu.core_type<tc>} {
    %0 = tpu.iota {dimensions = array<i32: 1>} : vector<1x256xi32>
    %c16_i32 = arith.constant 16 : i32
    %c0_i32 = arith.constant 0 : i32
    %1 = arith.cmpi eq, %c16_i32, %c0_i32 : i32
    %c1_i32 = arith.constant 1 : i32
    %2 = arith.select %1, %c1_i32, %c16_i32 : i32
    %3 = vector.broadcast %2 : i32 to vector<1x256xi32>
    %4 = arith.remsi %0, %3 : vector<1x256xi32>
    %c0_i32_0 = arith.constant 0 : i32
    %5 = vector.broadcast %c0_i32_0 : i32 to vector<1x256xi32>
    %6 = arith.cmpi ne, %4, %5 : vector<1x256xi32>
    %c0_i32_1 = arith.constant 0 : i32
    %7 = vector.broadcast %c0_i32_1 : i32 to vector<1x256xi32>
    %8 = arith.cmpi slt, %4, %7 : vector<1x256xi32>
    %c0_i32_2 = arith.constant 0 : i32
    %9 = arith.cmpi slt, %2, %c0_i32_2 : i32
    %10 = vector.broadcast %9 : i1 to vector<1x256xi1>
    %11 = vector.broadcast %10 : vector<1x256xi1> to vector<1x256xi1>
    %12 = arith.xori %8, %11 : vector<1x256xi1>
    %13 = arith.andi %12, %6 : vector<1x256xi1>
    %14 = vector.broadcast %2 : i32 to vector<1x256xi32>
    %15 = arith.addi %4, %14 : vector<1x256xi32>
    %16 = arith.select %13, %15, %4 : vector<1x256xi1>, vector<1x256xi32>
    %c0_i32_3 = arith.constant 0 : i32
    %17 = vector.broadcast %c0_i32_3 : i32 to vector<1x256xi32>
    %18 = arith.cmpi ne, %16, %17 : vector<1x256xi32>
    %c15_i32 = arith.constant 15 : i32
    %19 = vector.broadcast %c15_i32 : i32 to vector<1x256xi32>
    %20 = arith.cmpi ne, %16, %19 : vector<1x256xi32>
    %cst = arith.constant 0.000000e+00 : f32
    %21 = vector.broadcast %cst : f32 to vector<8x17xf32>
    %c0 = arith.constant 0 : index
    %c0_4 = arith.constant 0 : index
    %c0_5 = arith.constant 0 : index
    %22 = vector.load %arg0[%c0, %c0_4, %c0_5] : memref<2x8x256xf32, #tpu.memory_space<vmem>>, vector<1x8x256xf32>
    %23 = vector.shape_cast %22 : vector<1x8x256xf32> to vector<8x256xf32>
    %24 = tpu.concatenate %21, %23, %21 in 1 : vector<8x17xf32>, vector<8x256xf32>, vector<8x17xf32> -> vector<8x290xf32>
    %25 = vector.extract_strided_slice %24 {offsets = [0, 0], sizes = [8, 256], strides = [1, 1]} : vector<8x290xf32> to vector<8x256xf32>
    %cst_6 = arith.constant 0.000000e+00 : f32
    %26 = vector.shape_cast %18 : vector<1x256xi1> to vector<1x256xi1>
    %27 = vector.broadcast %26 : vector<1x256xi1> to vector<8x256xi1>
    %28 = vector.broadcast %cst_6 : f32 to vector<8x256xf32>
    %29 = arith.select %27, %25, %28 : vector<8x256xi1>, vector<8x256xf32>
    %30 = vector.extract_strided_slice %24 {offsets = [0, 1], sizes = [8, 256], strides = [1, 1]} : vector<8x290xf32> to vector<8x256xf32>
    %31 = vector.extract_strided_slice %24 {offsets = [0, 2], sizes = [8, 256], strides = [1, 1]} : vector<8x290xf32> to vector<8x256xf32>
    %cst_7 = arith.constant 0.000000e+00 : f32
    %32 = vector.shape_cast %20 : vector<1x256xi1> to vector<1x256xi1>
    %33 = vector.broadcast %32 : vector<1x256xi1> to vector<8x256xi1>
    %34 = vector.broadcast %cst_7 : f32 to vector<8x256xf32>
    %35 = arith.select %33, %31, %34 : vector<8x256xi1>, vector<8x256xf32>
    %36 = vector.extract_strided_slice %24 {offsets = [0, 16], sizes = [8, 256], strides = [1, 1]} : vector<8x290xf32> to vector<8x256xf32>
    %cst_8 = arith.constant 0.000000e+00 : f32
    %37 = vector.shape_cast %18 : vector<1x256xi1> to vector<1x256xi1>
    %38 = vector.broadcast %37 : vector<1x256xi1> to vector<8x256xi1>
    %39 = vector.broadcast %cst_8 : f32 to vector<8x256xf32>
    %40 = arith.select %38, %36, %39 : vector<8x256xi1>, vector<8x256xf32>
    %41 = vector.extract_strided_slice %24 {offsets = [0, 17], sizes = [8, 256], strides = [1, 1]} : vector<8x290xf32> to vector<8x256xf32>
    %42 = vector.extract_strided_slice %24 {offsets = [0, 18], sizes = [8, 256], strides = [1, 1]} : vector<8x290xf32> to vector<8x256xf32>
    %cst_9 = arith.constant 0.000000e+00 : f32
    %43 = vector.shape_cast %20 : vector<1x256xi1> to vector<1x256xi1>
    %44 = vector.broadcast %43 : vector<1x256xi1> to vector<8x256xi1>
    %45 = vector.broadcast %cst_9 : f32 to vector<8x256xf32>
    %46 = arith.select %44, %42, %45 : vector<8x256xi1>, vector<8x256xf32>
    %47 = vector.extract_strided_slice %24 {offsets = [0, 32], sizes = [8, 256], strides = [1, 1]} : vector<8x290xf32> to vector<8x256xf32>
    %cst_10 = arith.constant 0.000000e+00 : f32
    %48 = vector.shape_cast %18 : vector<1x256xi1> to vector<1x256xi1>
    %49 = vector.broadcast %48 : vector<1x256xi1> to vector<8x256xi1>
    %50 = vector.broadcast %cst_10 : f32 to vector<8x256xf32>
    %51 = arith.select %49, %47, %50 : vector<8x256xi1>, vector<8x256xf32>
    %52 = vector.extract_strided_slice %24 {offsets = [0, 33], sizes = [8, 256], strides = [1, 1]} : vector<8x290xf32> to vector<8x256xf32>
    %53 = vector.extract_strided_slice %24 {offsets = [0, 34], sizes = [8, 256], strides = [1, 1]} : vector<8x290xf32> to vector<8x256xf32>
    %cst_11 = arith.constant 0.000000e+00 : f32
    %54 = vector.shape_cast %20 : vector<1x256xi1> to vector<1x256xi1>
    %55 = vector.broadcast %54 : vector<1x256xi1> to vector<8x256xi1>
    %56 = vector.broadcast %cst_11 : f32 to vector<8x256xf32>
    %57 = arith.select %55, %53, %56 : vector<8x256xi1>, vector<8x256xf32>
    %58 = tpu.concatenate %29, %30, %35, %40, %41, %46, %51, %52, %57 in 0 : vector<8x256xf32>, vector<8x256xf32>, vector<8x256xf32>, vector<8x256xf32>, vector<8x256xf32>, vector<8x256xf32>, vector<8x256xf32>, vector<8x256xf32>, vector<8x256xf32> -> vector<72x256xf32>
    %c1 = arith.constant 1 : index
    %c0_12 = arith.constant 0 : index
    %c0_13 = arith.constant 0 : index
    %59 = vector.load %arg0[%c1, %c0_12, %c0_13] : memref<2x8x256xf32, #tpu.memory_space<vmem>>, vector<1x8x256xf32>
    %60 = vector.shape_cast %59 : vector<1x8x256xf32> to vector<8x256xf32>
    %61 = tpu.concatenate %21, %60, %21 in 1 : vector<8x17xf32>, vector<8x256xf32>, vector<8x17xf32> -> vector<8x290xf32>
    %62 = vector.extract_strided_slice %61 {offsets = [0, 0], sizes = [8, 256], strides = [1, 1]} : vector<8x290xf32> to vector<8x256xf32>
    %cst_14 = arith.constant 0.000000e+00 : f32
    %63 = vector.shape_cast %18 : vector<1x256xi1> to vector<1x256xi1>
    %64 = vector.broadcast %63 : vector<1x256xi1> to vector<8x256xi1>
    %65 = vector.broadcast %cst_14 : f32 to vector<8x256xf32>
    %66 = arith.select %64, %62, %65 : vector<8x256xi1>, vector<8x256xf32>
    %67 = vector.extract_strided_slice %61 {offsets = [0, 1], sizes = [8, 256], strides = [1, 1]} : vector<8x290xf32> to vector<8x256xf32>
    %68 = vector.extract_strided_slice %61 {offsets = [0, 2], sizes = [8, 256], strides = [1, 1]} : vector<8x290xf32> to vector<8x256xf32>
    %cst_15 = arith.constant 0.000000e+00 : f32
    %69 = vector.shape_cast %20 : vector<1x256xi1> to vector<1x256xi1>
    %70 = vector.broadcast %69 : vector<1x256xi1> to vector<8x256xi1>
    %71 = vector.broadcast %cst_15 : f32 to vector<8x256xf32>
    %72 = arith.select %70, %68, %71 : vector<8x256xi1>, vector<8x256xf32>
    %73 = vector.extract_strided_slice %61 {offsets = [0, 16], sizes = [8, 256], strides = [1, 1]} : vector<8x290xf32> to vector<8x256xf32>
    %cst_16 = arith.constant 0.000000e+00 : f32
    %74 = vector.shape_cast %18 : vector<1x256xi1> to vector<1x256xi1>
    %75 = vector.broadcast %74 : vector<1x256xi1> to vector<8x256xi1>
    %76 = vector.broadcast %cst_16 : f32 to vector<8x256xf32>
    %77 = arith.select %75, %73, %76 : vector<8x256xi1>, vector<8x256xf32>
    %78 = vector.extract_strided_slice %61 {offsets = [0, 17], sizes = [8, 256], strides = [1, 1]} : vector<8x290xf32> to vector<8x256xf32>
    %79 = vector.extract_strided_slice %61 {offsets = [0, 18], sizes = [8, 256], strides = [1, 1]} : vector<8x290xf32> to vector<8x256xf32>
    %cst_17 = arith.constant 0.000000e+00 : f32
    %80 = vector.shape_cast %20 : vector<1x256xi1> to vector<1x256xi1>
    %81 = vector.broadcast %80 : vector<1x256xi1> to vector<8x256xi1>
    %82 = vector.broadcast %cst_17 : f32 to vector<8x256xf32>
    %83 = arith.select %81, %79, %82 : vector<8x256xi1>, vector<8x256xf32>
    %84 = vector.extract_strided_slice %61 {offsets = [0, 32], sizes = [8, 256], strides = [1, 1]} : vector<8x290xf32> to vector<8x256xf32>
    %cst_18 = arith.constant 0.000000e+00 : f32
    %85 = vector.shape_cast %18 : vector<1x256xi1> to vector<1x256xi1>
    %86 = vector.broadcast %85 : vector<1x256xi1> to vector<8x256xi1>
    %87 = vector.broadcast %cst_18 : f32 to vector<8x256xf32>
    %88 = arith.select %86, %84, %87 : vector<8x256xi1>, vector<8x256xf32>
    %89 = vector.extract_strided_slice %61 {offsets = [0, 33], sizes = [8, 256], strides = [1, 1]} : vector<8x290xf32> to vector<8x256xf32>
    %90 = vector.extract_strided_slice %61 {offsets = [0, 34], sizes = [8, 256], strides = [1, 1]} : vector<8x290xf32> to vector<8x256xf32>
    %cst_19 = arith.constant 0.000000e+00 : f32
    %91 = vector.shape_cast %20 : vector<1x256xi1> to vector<1x256xi1>
    %92 = vector.broadcast %91 : vector<1x256xi1> to vector<8x256xi1>
    %93 = vector.broadcast %cst_19 : f32 to vector<8x256xf32>
    %94 = arith.select %92, %90, %93 : vector<8x256xi1>, vector<8x256xf32>
    %95 = tpu.concatenate %66, %67, %72, %77, %78, %83, %88, %89, %94 in 0 : vector<8x256xf32>, vector<8x256xf32>, vector<8x256xf32>, vector<8x256xf32>, vector<8x256xf32>, vector<8x256xf32>, vector<8x256xf32>, vector<8x256xf32>, vector<8x256xf32> -> vector<72x256xf32>
    %96 = tpu.concatenate %58, %95 in 1 : vector<72x256xf32>, vector<72x256xf32> -> vector<72x512xf32>
    %c0_20 = arith.constant 0 : index
    %c0_21 = arith.constant 0 : index
    %97 = vector.load %arg1[%c0_20, %c0_21] : memref<16x72xf32, #tpu.memory_space<vmem>>, vector<16x72xf32>
    %cst_22 = arith.constant dense<0.000000e+00> : vector<16x512xf32>
    %98 = tpu.matmul %97, %96, %cst_22 {dimension_numbers = #tpu.dot_dimension_numbers<[1], [0], [0], [1], [0, 0, 1, 1], [], []>} : vector<16x72xf32>, vector<72x512xf32>, vector<16x512xf32> -> vector<16x512xf32>
    %cst_23 = arith.constant dense<0.000000e+00> : vector<16xf32>
    %99 = vector.multi_reduction <add>, %98, %cst_23 [1] : vector<16x512xf32> to vector<16xf32>
    %100 = vector.shape_cast %99 : vector<16xf32> to vector<16x1xf32>
    %cst_24 = arith.constant 5.120000e+02 : f32
    %101 = vector.broadcast %cst_24 : f32 to vector<16x1xf32>
    %102 = arith.divf %100, %101 : vector<16x1xf32>
    %103 = vector.broadcast %102 : vector<16x1xf32> to vector<16x512xf32>
    %104 = arith.subf %98, %103 : vector<16x512xf32>
    %105 = vector.broadcast %102 : vector<16x1xf32> to vector<16x512xf32>
    %106 = arith.subf %98, %105 : vector<16x512xf32>
    %107 = arith.mulf %104, %106 : vector<16x512xf32>
    %cst_25 = arith.constant dense<0.000000e+00> : vector<16xf32>
    %108 = vector.multi_reduction <add>, %107, %cst_25 [1] : vector<16x512xf32> to vector<16xf32>
    %109 = vector.shape_cast %108 : vector<16xf32> to vector<16x1xf32>
    %cst_26 = arith.constant 5.120000e+02 : f32
    %110 = vector.broadcast %cst_26 : f32 to vector<16x1xf32>
    %111 = arith.divf %109, %110 : vector<16x1xf32>
    %112 = vector.broadcast %102 : vector<16x1xf32> to vector<16x512xf32>
    %113 = arith.subf %98, %112 : vector<16x512xf32>
    %cst_27 = arith.constant 9.99999974E-6 : f32
    %114 = vector.broadcast %cst_27 : f32 to vector<16x1xf32>
    %115 = arith.addf %111, %114 : vector<16x1xf32>
    %116 = math.rsqrt %115 : vector<16x1xf32>
    %117 = vector.broadcast %116 : vector<16x1xf32> to vector<16x512xf32>
    %118 = arith.mulf %113, %117 : vector<16x512xf32>
    %c0_28 = arith.constant 0 : index
    %c0_29 = arith.constant 0 : index
    %119 = vector.load %arg2[%c0_28, %c0_29] : memref<16x1xf32, #tpu.memory_space<vmem>>, vector<16x1xf32>
    %120 = vector.broadcast %119 : vector<16x1xf32> to vector<16x512xf32>
    %121 = arith.mulf %118, %120 : vector<16x512xf32>
    %c0_30 = arith.constant 0 : index
    %c0_31 = arith.constant 0 : index
    %122 = vector.load %arg3[%c0_30, %c0_31] : memref<16x1xf32, #tpu.memory_space<vmem>>, vector<16x1xf32>
    %123 = vector.broadcast %122 : vector<16x1xf32> to vector<16x512xf32>
    %124 = arith.addf %121, %123 : vector<16x512xf32>
    %125 = vector.extract_strided_slice %124 {offsets = [0, 0], sizes = [16, 256], strides = [1, 1]} : vector<16x512xf32> to vector<16x256xf32>
    %c0_32 = arith.constant 0 : index
    %c0_33 = arith.constant 0 : index
    %c0_34 = arith.constant 0 : index
    %126 = vector.load %arg4[%c0_32, %c0_33, %c0_34] : memref<2x16x256xf32, #tpu.memory_space<vmem>>, vector<1x16x256xf32>
    %127 = vector.shape_cast %126 : vector<1x16x256xf32> to vector<16x256xf32>
    %128 = vector.shape_cast %125 : vector<16x256xf32> to vector<1x16x256xf32>
    tpu.vector_store %arg4[%c0_32, %c0_33, %c0_34], %128 {strides = array<i32>} : memref<2x16x256xf32, #tpu.memory_space<vmem>>, vector<1x16x256xf32>,
    %129 = vector.extract_strided_slice %124 {offsets = [0, 256], sizes = [16, 256], strides = [1, 1]} : vector<16x512xf32> to vector<16x256xf32>
    %c1_35 = arith.constant 1 : index
    %c0_36 = arith.constant 0 : index
    %c0_37 = arith.constant 0 : index
    %130 = vector.load %arg4[%c1_35, %c0_36, %c0_37] : memref<2x16x256xf32, #tpu.memory_space<vmem>>, vector<1x16x256xf32>
    %131 = vector.shape_cast %130 : vector<1x16x256xf32> to vector<16x256xf32>
    %132 = vector.shape_cast %129 : vector<16x256xf32> to vector<1x16x256xf32>
    tpu.vector_store %arg4[%c1_35, %c0_36, %c0_37], %132 {strides = array<i32>} : memref<2x16x256xf32, #tpu.memory_space<vmem>>, vector<1x16x256xf32>,
    return
  }
}

</mosaic_0001>

<bundles_post_ra>
// kernel: conv_block.1
= control target key start
LH: loop header
LB: loop body
LE: loop exit
PB: predicated region body
PF: predicated region fallthrough
CT: control target
= control target key end

     0   :  { %s616_s19 = smov 17   ;;  %vm56_vm0 = vcmask 138240   ;;  %s617_s24 = smov 94   ;;  %v17_v17 = vlaneseq  ;;  %vm133_vm1 = vcmask 769024   ;;  %vm168_vm4 = vcmask 777216   ;;  %s872_s0 = inlined_call_operand.vmem [shape: f32[2,8,256], index: 0, kind: input, shape index: {}]   ;;  %s873_s1 = inlined_call_operand.vmem [shape: f32[16,72], index: 1, kind: input, shape index: {}]   ;;  %s874_s2 = inlined_call_operand.vmem [shape: f32[16,1], index: 2, kind: input, shape index: {}]   ;;  %s875_s3 = inlined_call_operand.vmem [shape: f32[16,1], index: 3, kind: input, shape index: {}]   ;;  %s876_s4 = inlined_call_operand.vmem [shape: f32[2,16,256], index: 4, kind: output, shape index: {}]  }
   0x1   :  { %v513_v0 = vld [vmem:[%s872_s0 + $0x10] sm:$0xff]  ;;  %v48_v1 = vld [vmem:[%s872_s0] sm:$0xff]  ;;  %v514_v2 = vld [vmem:[%s872_s0 + $0x18] sm:$0xff]  ;;  %s619_s25 = smov 96   ;;  %s620_s26 = smov 110   ;;  %vm120_vm5 = vcmask 785408  }
   0x2   :  { %178 = vrot.lane.b32.xlu0 %v513_v0, %s616_s19  ;;  %52 = vrot.lane.b32.xlu1 %v48_v1, %s616_s19  ;;  %v49_v3 = vld [vmem:[%s872_s0 + $0x8] sm:$0xff]  ;;  %s618_s0 = smov 95   ;;  %s621_s27 = smov 111   ;;  %v18_v18 = vand.u32 127, %v17_v17  ;;  %vm107_vm8 = vcmask 900096   ;;  %vm157_vm9 = vcmask 908288  }
   0x3   :  { %s622_s28 = smov 112   ;;  %s623_s29 = smov 126   ;;  %vm94_vm10 = vcmask 916480   ;;  %vm81_vm11 = vcmask 1031168   ;;  %vm146_vm12 = vcmask 1039360   ;;  %vm284_vm13 = vcmask 588800  }
   0x4   :  { %s624_s30 = smov 127   ;;  %v24_v20 = vand.u32 15, %v18_v18  ;;  %v19_v25 = vadd.s32 128, %v18_v18 }
   0x6   :  { %vm702_vm2 = vcmp.ne.s32.totalorder %v24_v20, 15  ;;  %v31_v27 = vand.u32 15, %v19_v25  ;;  %vm724_vm6 = vcmp.ne.s32.totalorder %v24_v20, 0 }
   0x8   :  { %vm709_vm3 = vcmp.ne.s32.totalorder %v31_v27, 15  ;;  %vm733_vm7 = vcmp.ne.s32.totalorder %v31_v27, 0 }
   0xa   :  { %180 = vrot.lane.b32.xlu0 %v514_v2, %s616_s19  ;;  %54 = vrot.lane.b32.xlu1 %v49_v3, %s616_s19 }
  0x74   :  { %v179_v4 = vpop.permute.xlu0 %178  ;;  %v53_v6 = vpop.permute.xlu1 %52 }
  0x75   :  { %v665_v5 = vsel %vm56_vm0, 0.0, %v179_v4  ;;  %v676_v12 = vsel %vm56_vm0, 0.0, %v53_v6 }
  0x76   :  { %240 = vrot.lane.b32.xlu2 %v665_v5, %s617_s24 }
  0x7c   :  { %v181_v7 = vpop.permute.xlu0 %180  ;;  %v55_v11 = vpop.permute.xlu1 %54 }
  0x7d   :  { %v669_v8 = vsel %vm56_vm0, %v179_v4, %v181_v7  ;;  %v187_v9 = vsel %vm56_vm0, %v181_v7, 0.0  ;;  %v679_v13 = vsel %vm56_vm0, %v53_v6, %v55_v11  ;;  %v62_v14 = vsel %vm56_vm0, %v55_v11, 0.0 }
  0x7e   :  { %244 = vrot.lane.b32.xlu0 %v187_v9, %s617_s24  ;;  %242 = vrot.lane.b32.xlu2 %v669_v8, %s617_s24  ;;  %v562_v10 = vpack.i.bf16 %v669_v8, %v665_v5  ;;  %v567_v15 = vpack.i.bf16 %v676_v12, %v187_v9  ;;  %v572_v16 = vpack.i.bf16 %v62_v14, %v679_v13 }
  0x80   :  { %563 = vrot.lane.b32.xlu1 %v562_v10, %s618_s0 }
  0x86   :  { %127 = vrot.lane.b32.xlu2 %v676_v12, %s617_s24  ;;  %129 = vrot.lane.b32.xlu0 %v679_v13, %s617_s24 }
  0x88   :  { %131 = vrot.lane.b32.xlu1 %v62_v14, %s617_s24 }
  0x8e   :  { %228 = vrot.lane.b32.xlu2 %v665_v5, %s619_s25  ;;  %230 = vrot.lane.b32.xlu0 %v669_v8, %s619_s25 }
  0x90   :  { %568 = vrot.lane.b32.xlu1 %v567_v15, %s618_s0 }
  0x96   :  { %573 = vrot.lane.b32.xlu2 %v572_v16, %s618_s0  ;;  %216 = vrot.lane.b32.xlu0 %v665_v5, %s620_s26 }
  0x98   :  { %218 = vrot.lane.b32.xlu1 %v669_v8, %s620_s26 }
  0x9e   :  { %232 = vrot.lane.b32.xlu2 %v187_v9, %s619_s25  ;;  %114 = vrot.lane.b32.xlu0 %v676_v12, %s619_s25 }
  0xa0   :  { %116 = vrot.lane.b32.xlu1 %v679_v13, %s619_s25 }
  0xa6   :  { %118 = vrot.lane.b32.xlu2 %v62_v14, %s619_s25  ;;  %220 = vrot.lane.b32.xlu0 %v187_v9, %s620_s26 }
  0xa8   :  { %578 = vrot.lane.b32.xlu1 %v562_v10, %s621_s27 }
  0xae   :  { %101 = vrot.lane.b32.xlu2 %v676_v12, %s620_s26  ;;  %103 = vrot.lane.b32.xlu0 %v679_v13, %s620_s26 }
  0xb0   :  { %105 = vrot.lane.b32.xlu1 %v62_v14, %s620_s26 }
  0xb6   :  { %204 = vrot.lane.b32.xlu2 %v665_v5, %s622_s28  ;;  %206 = vrot.lane.b32.xlu0 %v669_v8, %s622_s28 }
  0xb8   :  { %583 = vrot.lane.b32.xlu1 %v567_v15, %s621_s27 }
  0xbe   :  { %588 = vrot.lane.b32.xlu2 %v572_v16, %s621_s27  ;;  %192 = vrot.lane.b32.xlu0 %v665_v5, %s623_s29 }
  0xc0   :  { %194 = vrot.lane.b32.xlu1 %v669_v8, %s623_s29 }
  0xc6   :  { %208 = vrot.lane.b32.xlu2 %v187_v9, %s622_s28  ;;  %88 = vrot.lane.b32.xlu0 %v676_v12, %s622_s28 }
  0xc8   :  { %90 = vrot.lane.b32.xlu1 %v679_v13, %s622_s28 }
  0xce   :  { %92 = vrot.lane.b32.xlu2 %v62_v14, %s622_s28  ;;  %196 = vrot.lane.b32.xlu0 %v187_v9, %s623_s29 }
  0xd0   :  { %v241_v19 = vpop.permute.xlu2 %240  ;;  %593 = vrot.lane.b32.xlu1 %v562_v10, %s624_s30 }
  0xd6   :  { %75 = vrot.lane.b32.xlu2 %v676_v12, %s623_s29  ;;  %77 = vrot.lane.b32.xlu0 %v679_v13, %s623_s29 }
  0xd8   :  { %v243_v22 = vpop.permute.xlu2 %242  ;;  %79 = vrot.lane.b32.xlu1 %v62_v14, %s623_s29 }
  0xd9   :  { %v246_v23 = vsel %vm133_vm1, %v241_v19, %v243_v22 }
  0xda   :  { %531 = vmatpush.msk.msra.mxu2 %vm702_vm2, %v246_v23 }
  0xde   :  { %598 = vrot.lane.b32.xlu2 %v567_v15, %s624_s30  ;;  %603 = vrot.lane.b32.xlu0 %v572_v16, %s624_s30 }
  0xe0   :  { %v128_v24 = vpop.permute.xlu2 %127 }
  0xe8   :  { %v229_v26 = vpop.permute.xlu2 %228 }
  0xf0   :  { %v245_v29 = vpop.permute.xlu0 %244  ;;  %v574_v30 = vpop.permute.xlu2 %573 }
  0xf1   :  { %v247_v31 = vsel %vm133_vm1, %v243_v22, %v245_v29  ;;  %v576_v38 = vunpack.i.h.bf16 %v574_v30  ;;  %v575_v39 = vunpack.i.l.bf16 %v574_v30 }
  0xf2   :  { %539 = vmatpush.msk.msra.mxu3 %vm709_vm3, %v247_v31  ;;  %v564_v32 = vpop.permute.xlu1 %563 }
  0xf3   :  { %v566_v33 = vunpack.i.h.bf16 %v564_v32  ;;  %v565_v34 = vunpack.i.l.bf16 %v564_v32  ;;  %v170_v43 = vsel %vm168_vm4, %v575_v39, %v576_v38 }
  0xf5   :  { %v278_v35 = vsel %vm168_vm4, %v565_v34, %v566_v33 }
  0xf6   :  { %345 = vmatpush.msra.mxu2 %v278_v35 }
  0xf8   :  { %v233_v36 = vpop.permute.xlu2 %232  ;;  %v130_v37 = vpop.permute.xlu0 %129 }
  0xf9   :  { %v134_v40 = vsel %vm133_vm1, %v128_v24, %v130_v37 }
  0xfa   :  { %515 = vmatpush.msk.msra.mxu0 %vm702_vm2, %v134_v40  ;;  %v132_v41 = vpop.permute.xlu1 %131 }
  0xfb   :  { %v135_v42 = vsel %vm133_vm1, %v130_v37, %v132_v41 }
  0xfc   :  { %523 = vmatpush.msk.msra.mxu1 %vm709_vm3, %v135_v42 }
  0xfe   :  { %322 = vmatpush.msra.mxu1 %v170_v43 }
 0x100   :  { %v119_v45 = vpop.permute.xlu2 %118  ;;  %v231_v46 = vpop.permute.xlu0 %230 }
 0x101   :  { %v234_v47 = vsel %vm120_vm5, %v229_v26, %v231_v46  ;;  %v235_v54 = vsel %vm120_vm5, %v231_v46, %v233_v36 }
 0x102   :  { %v569_v48 = vpop.permute.xlu1 %568  ;;  %532 = vmatpush.msk.msra.mxu2 %vm724_vm6, %v234_v47 }
 0x103   :  { %v571_v49 = vunpack.i.h.bf16 %v569_v48  ;;  %v570_v50 = vunpack.i.l.bf16 %v569_v48  ;;  %v282_v48 = vld [vmem:[%s873_s1] sm:$0xff] }
 0x105   :  { %v169_v51 = vsel %vm168_vm4, %v571_v49, %v575_v39  ;;  %v279_v52 = vsel %vm168_vm4, %v566_v33, %v570_v50 }
 0x106   :  { %299 = vmatpush.msra.mxu0 %v169_v51  ;;  %368 = vmatpush.msra.mxu3 %v279_v52 }
 0x108   :  { %v102_v55 = vpop.permute.xlu2 %101  ;;  %v217_v56 = vpop.permute.xlu0 %216  ;;  %540 = vmatpush.msk.msra.mxu3 %vm733_vm7, %v235_v54 }
 0x10a   :  { %v219_v57 = vpop.permute.xlu1 %218 }
 0x10b   :  { %v222_v58 = vsel %vm107_vm8, %v217_v56, %v219_v57 }
 0x10c   :  { %533 = vmatpush.msk.msra.mxu2 %vm702_vm2, %v222_v58 }
 0x110   :  { %v205_v59 = vpop.permute.xlu2 %204  ;;  %v115_v60 = vpop.permute.xlu0 %114 }
 0x112   :  { %v117_v61 = vpop.permute.xlu1 %116 }
 0x113   :  { %v121_v62 = vsel %vm120_vm5, %v115_v60, %v117_v61  ;;  %v122_v63 = vsel %vm120_vm5, %v117_v61, %v119_v45 }
 0x114   :  { %516 = vmatpush.msk.msra.mxu0 %vm724_vm6, %v121_v62  ;;  %524 = vmatpush.msk.msra.mxu1 %vm733_vm7, %v122_v63 }
 0x118   :  { %v589_v0 = vpop.permute.xlu2 %588  ;;  %v221_v1 = vpop.permute.xlu0 %220 }
 0x119   :  { %v223_v2 = vsel %vm107_vm8, %v219_v57, %v221_v1  ;;  %v591_v10 = vunpack.i.h.bf16 %v589_v0  ;;  %v590_v11 = vunpack.i.l.bf16 %v589_v0 }
 0x11a   :  { %v579_v3 = vpop.permute.xlu1 %578  ;;  %541 = vmatpush.msk.msra.mxu3 %vm709_vm3, %v223_v2 }
 0x11b   :  { %v581_v4 = vunpack.i.h.bf16 %v579_v3  ;;  %v580_v6 = vunpack.i.l.bf16 %v579_v3  ;;  %v159_v18 = vsel %vm157_vm9, %v590_v11, %v591_v10  ;;  %v625_v3 = vmov 512.0  }
 0x11c   :  { %610 = vrcp.f32 %v625_v3 }
 0x11d   :  { %v268_v7 = vsel %vm157_vm9, %v580_v6, %v581_v4 }
 0x11e   :  { %348 = vmatpush.msra.mxu2 %v268_v7 }
 0x120   :  { %v104_v9 = vpop.permute.xlu0 %103  ;;  %v209_v15 = vpop.permute.xlu2 %208 }
 0x121   :  { %v108_v14 = vsel %vm107_vm8, %v102_v55, %v104_v9 }
 0x122   :  { %v106_v16 = vpop.permute.xlu1 %105  ;;  %517 = vmatpush.msk.msra.mxu0 %vm702_vm2, %v108_v14 }
 0x123   :  { %v109_v17 = vsel %vm107_vm8, %v104_v9, %v106_v16  ;;  %v460_v9 = vld [vmem:[%s874_s2] sm:$0xff] }
 0x124   :  { %525 = vmatpush.msk.msra.mxu1 %vm709_vm3, %v109_v17 }
 0x126   :  { %325 = vmatpush.msra.mxu1 %v159_v18 }
 0x128   :  { %v207_v19 = vpop.permute.xlu0 %206  ;;  %v93_v25 = vpop.permute.xlu2 %92 }
 0x129   :  { %v210_v20 = vsel %vm94_vm10, %v205_v59, %v207_v19  ;;  %v211_v29 = vsel %vm94_vm10, %v207_v19, %v209_v15  ;;  %v481_v15 = vld [vmem:[%s875_s3 + $0x8] sm:$0xff] }
 0x12a   :  { %v584_v22 = vpop.permute.xlu1 %583  ;;  %534 = vmatpush.msk.msra.mxu2 %vm724_vm6, %v210_v20 }
 0x12b   :  { %v586_v23 = vunpack.i.h.bf16 %v584_v22  ;;  %v585_v24 = vunpack.i.l.bf16 %v584_v22 }
 0x12d   :  { %v158_v26 = vsel %vm157_vm9, %v586_v23, %v590_v11  ;;  %v269_v27 = vsel %vm157_vm9, %v581_v4, %v585_v24  ;;  %v611_v4 = vpop.eup %610  ;;  %v626_v11 = vmov 0  }
 0x12e   :  { %302 = vmatpush.msra.mxu0 %v158_v26  ;;  %371 = vmatpush.msra.mxu3 %v269_v27  ;;  %v394_v6 = vmul.f32 512.0, %v611_v4  ;;  %vm398_vm14 = vweird.f32 %v611_v4 }
 0x12f   :  { %607 = vset.pattern.permute.xlu1 %v626_v11  ;;  %609 = vset.pattern.permute.xlu0 %v626_v11 }
 0x130   :  { %v193_v30 = vpop.permute.xlu0 %192  ;;  %542 = vmatpush.msk.msra.mxu3 %vm733_vm7, %v211_v29  ;;  %v76_v33 = vpop.permute.xlu2 %75  ;;  %v395_v7 = vsub.f32 1.0, %v394_v6  ;;  %608 = vset.pattern.permute.xlu2 %v626_v11 }
 0x132   :  { %v195_v31 = vpop.permute.xlu1 %194  ;;  %v396_v10 = vmul.f32 %v611_v4, %v395_v7 }
 0x133   :  { %v198_v32 = vsel %vm81_vm11, %v193_v30, %v195_v31 }
 0x134   :  { %535 = vmatpush.msk.msra.mxu2 %vm702_vm2, %v198_v32  ;;  %v397_v14 = vadd.f32 %v611_v4, %v396_v10 }
 0x136   :  { %v399_v16 = vsel %vm398_vm14, %v611_v4, %v397_v14 }
 0x138   :  { %v89_v34 = vpop.permute.xlu0 %88  ;;  %v599_v38 = vpop.permute.xlu2 %598 }
 0x139   :  { %v600_v42 = vunpack.i.l.bf16 %v599_v38  ;;  %v601_v54 = vunpack.i.h.bf16 %v599_v38 }
 0x13a   :  { %v91_v35 = vpop.permute.xlu1 %90 }
 0x13b   :  { %v95_v36 = vsel %vm94_vm10, %v89_v34, %v91_v35  ;;  %v96_v37 = vsel %vm94_vm10, %v91_v35, %v93_v25 }
 0x13c   :  { %518 = vmatpush.msk.msra.mxu0 %vm724_vm6, %v95_v36  ;;  %526 = vmatpush.msk.msra.mxu1 %vm733_vm7, %v96_v37 }
 0x140   :  { %v197_v39 = vpop.permute.xlu0 %196 }
 0x141   :  { %v199_v40 = vsel %vm81_vm11, %v195_v31, %v197_v39 }
 0x142   :  { %v594_v41 = vpop.permute.xlu1 %593  ;;  %543 = vmatpush.msk.msra.mxu3 %vm709_vm3, %v199_v40 }
 0x143   :  { %v596_v43 = vunpack.i.h.bf16 %v594_v41  ;;  %v595_v45 = vunpack.i.l.bf16 %v594_v41 }
 0x145   :  { %v258_v46 = vsel %vm146_vm12, %v595_v45, %v596_v43  ;;  %v259_v47 = vsel %vm146_vm12, %v596_v43, %v600_v42 }
 0x146   :  { %351 = vmatpush.msra.mxu2 %v258_v46  ;;  %374 = vmatpush.msra.mxu3 %v259_v47  ;;  %v480_v46 = vld [vmem:[%s875_s3] sm:$0xff]  ;;  %v461_v47 = vld [vmem:[%s874_s2 + $0x8] sm:$0xff] }
 0x148   :  { %v78_v49 = vpop.permute.xlu0 %77  ;;  %536 = vmatpush.msk.msra.mxu2 %vm724_vm6, %v665_v5  ;;  %544 = vmatpush.msk.msra.mxu3 %vm733_vm7, %v669_v8  ;;  %v283_v5 = vld [vmem:[%s873_s1 + $0x8] sm:$0xff] }
 0x149   :  { %v82_v50 = vsel %vm81_vm11, %v76_v33, %v78_v49  ;;  %537 = vmatmul.msk.f32.vlgmr.msra.gmra.mxu2 %vm284_vm13, %v282_v48  ;;  %545 = vmatmul.msk.f32.vlgmr.msra.gmra.mxu3 %vm284_vm13, %v282_v48 }
 0x14a   :  { %v80_v51 = vpop.permute.xlu1 %79  ;;  %519 = vmatpush.msk.msra.mxu0 %vm702_vm2, %v82_v50 }
 0x14b   :  { %v83_v52 = vsel %vm81_vm11, %v78_v49, %v80_v51 }
 0x14c   :  { %527 = vmatpush.msk.msra.mxu1 %vm709_vm3, %v83_v52 }
 0x150   :  { %v604_v8 = vpop.permute.xlu0 %603 }
 0x151   :  { %v606_v55 = vunpack.i.h.bf16 %v604_v8  ;;  %v605_v56 = vunpack.i.l.bf16 %v604_v8  ;;  %538 = vmatmul.msk.f32.gmra.mxu2 %vm284_vm13, %v283_v5  ;;  %546 = vmatmul.msk.f32.gmra.mxu3 %vm284_vm13, %v283_v5 }
 0x153   :  { %v147_v21 = vsel %vm146_vm12, %v601_v54, %v605_v56  ;;  %v148_v57 = vsel %vm146_vm12, %v605_v56, %v606_v55 }
 0x154   :  { %305 = vmatpush.msra.mxu0 %v147_v21  ;;  %328 = vmatpush.msra.mxu1 %v148_v57 }
 0x156   :  { %520 = vmatpush.msk.msra.mxu0 %vm724_vm6, %v676_v12  ;;  %528 = vmatpush.msk.msra.mxu1 %vm733_vm7, %v679_v13 }
 0x157   :  { %521 = vmatmul.msk.f32.vlgmr.msra.gmra.mxu0 %vm284_vm13, %v282_v48  ;;  %529 = vmatmul.msk.f32.vlgmr.msra.gmra.mxu1 %vm284_vm13, %v282_v48 }
 0x15f   :  { %522 = vmatmul.msk.f32.gmra.mxu0 %vm284_vm13, %v283_v5  ;;  %530 = vmatmul.msk.f32.gmra.mxu1 %vm284_vm13, %v283_v5 }
 0x1cc   :  { %v354_v28 = vpop.f32.mrf.mxu2  ;;  %v377_v58 = vpop.f32.mrf.mxu3 }
 0x1d4   :  { %v308_v59 = vpop.f32.mrf.mxu0  ;;  %v331_v60 = vpop.f32.mrf.mxu1 }
 0x1d5   :  { %v383_v61 = vadd.f32 %v331_v60, %v308_v59  ;;  %v357_v12 = vpop.f32.mrf.mxu2  ;;  %v380_v0 = vpop.f32.mrf.mxu3 }
 0x1d7   :  { %v384_v62 = vadd.f32 %v383_v61, %v354_v28 }
 0x1d9   :  { %v385_v44 = vadd.f32 %v384_v62, %v377_v58 }
 0x1db   :  { %386 = vadd.xlane.f32.xlu1 %v385_v44 }
 0x1dc   :  { %v311_v63 = vpop.f32.mrf.mxu0  ;;  %v334_v53 = vpop.f32.mrf.mxu1 }
 0x1dd   :  { %v388_v13 = vadd.f32 %v334_v53, %v311_v63 }
 0x1df   :  { %v389_v1 = vadd.f32 %v388_v13, %v357_v12 }
 0x1e1   :  { %v390_v2 = vadd.f32 %v389_v1, %v380_v0 }
 0x1e3   :  { %391 = vadd.xlane.f32.xlu2 %v390_v2 }
 0x1f4   :  { %464 = vperm.xlu1 %607, %v460_v9  }
 0x1fc   :  { %489 = vperm.xlu1 %607, %v481_v15  }
 0x24e   :  { %v387_v17 = vpop.xlane.xlu1 %386 }
 0x24f   :  { %v400_v18 = vmul.f32 %v399_v16, %v387_v17 }
 0x251   :  { %v402_v19 = vsub.f32 %v308_v59, %v400_v18  ;;  %v403_v20 = vsub.f32 %v331_v60, %v400_v18  ;;  %v404_v22 = vsub.f32 %v354_v28, %v400_v18  ;;  %v405_v23 = vsub.f32 %v377_v58, %v400_v18 }
 0x253   :  { %v410_v24 = vmul.f32 %v402_v19, %v402_v19  ;;  %v411_v25 = vmul.f32 %v403_v20, %v403_v20  ;;  %v412_v26 = vmul.f32 %v404_v22, %v404_v22  ;;  %v413_v31 = vmul.f32 %v405_v23, %v405_v23 }
 0x255   :  { %v418_v27 = vadd.f32 %v411_v25, %v410_v24 }
 0x256   :  { %v392_v29 = vpop.xlane.xlu2 %391 }
 0x257   :  { %v401_v30 = vmul.f32 %v399_v16, %v392_v29  ;;  %v419_v32 = vadd.f32 %v418_v27, %v412_v26 }
 0x259   :  { %v822_v33 = vsub.f32 %v311_v63, %v401_v30  ;;  %v824_v34 = vsub.f32 %v334_v53, %v401_v30  ;;  %v420_v35 = vadd.f32 %v419_v32, %v413_v31  ;;  %v826_v36 = vsub.f32 %v357_v12, %v401_v30 }
 0x25a   :  { %v828_v37 = vsub.f32 %v380_v0, %v401_v30 }
 0x25b   :  { %421 = vadd.xlane.f32.xlu0 %v420_v35  ;;  %v414_v38 = vmul.f32 %v822_v33, %v822_v33  ;;  %v415_v39 = vmul.f32 %v824_v34, %v824_v34  ;;  %v416_v40 = vmul.f32 %v826_v36, %v826_v36 }
 0x25c   :  { %v417_v42 = vmul.f32 %v828_v37, %v828_v37 }
 0x25d   :  { %v423_v41 = vadd.f32 %v415_v39, %v414_v38 }
 0x25f   :  { %v424_v43 = vadd.f32 %v423_v41, %v416_v40 }
 0x261   :  { %v425_v45 = vadd.f32 %v424_v43, %v417_v42 }
 0x263   :  { %426 = vadd.xlane.f32.xlu2 %v425_v45 }
 0x266   :  { %v465_v53 = vpop.permute.xlu1 %464 }
 0x26e   :  { %v490_v25 = vpop.permute.xlu1 %489 }
 0x26f   :  { %484 = vperm.xlu0 %609, %v480_v46  }
 0x27b   :  { %469 = vperm.xlu2 %608, %v461_v47  }
 0x2ce   :  { %v422_v48 = vpop.xlane.xlu0 %421 }
 0x2cf   :  { %v428_v49 = vmul.f32 %v422_v48, %v399_v16 }
 0x2d1   :  { %v430_v50 = vadd.f32 1e-05, %v428_v49 }
 0x2d3   :  { %612 = vrsqrt.f32 %v430_v50  ;;  %vm438_vm0 = vweird.f32 %v430_v50 }
 0x2d6   :  { %v427_v51 = vpop.xlane.xlu2 %426 }
 0x2d7   :  { %v429_v52 = vmul.f32 %v427_v51, %v399_v16 }
 0x2d9   :  { %v613_v5 = vpop.eup %612  ;;  %v431_v8 = vadd.f32 1e-05, %v429_v52 }
 0x2da   :  { %v433_v54 = vmul.f32 %v613_v5, %v430_v50  ;;  %vm439_vm15 = vweird.f32 %v613_v5 }
 0x2db   :  { %614 = vrsqrt.f32 %v431_v8  ;;  %vm440_vm1 = vmor %vm438_vm0, %vm439_vm15  ;;  %vm448_vm3 = vweird.f32 %v431_v8 }
 0x2dc   :  { %v434_v55 = vmul.f32 %v613_v5, %v433_v54 }
 0x2de   :  { %v435_v56 = vmul.f32 0.5, %v434_v55  ;;  %v470_v15 = vpop.permute.xlu2 %469 }
 0x2e0   :  { %v436_v21 = vsub.f32 1.5, %v435_v56 }
 0x2e1   :  { %v615_v57 = vpop.eup %614  ;;  %v485_v13 = vpop.permute.xlu0 %484 }
 0x2e2   :  { %v437_v28 = vmul.f32 %v613_v5, %v436_v21  ;;  %v443_v58 = vmul.f32 %v615_v57, %v431_v8  ;;  %vm449_vm2 = vweird.f32 %v615_v57 }
 0x2e3   :  { %vm450_vm4 = vmor %vm448_vm3, %vm449_vm2 }
 0x2e4   :  { %v441_v59 = vsel %vm440_vm1, %v613_v5, %v437_v28  ;;  %v444_v60 = vmul.f32 %v615_v57, %v443_v58 }
 0x2e5   :  { %v452_v61 = vmul.f32 %v441_v59, %v402_v19  ;;  %v453_v62 = vmul.f32 %v441_v59, %v403_v20  ;;  %v454_v44 = vmul.f32 %v441_v59, %v404_v22  ;;  %v455_v12 = vmul.f32 %v441_v59, %v405_v23 }
 0x2e6   :  { %v445_v63 = vmul.f32 0.5, %v444_v60 }
 0x2e7   :  { %v472_v0 = vmul.f32 %v465_v53, %v452_v61  ;;  %v473_v1 = vmul.f32 %v465_v53, %v453_v62  ;;  %v474_v2 = vmul.f32 %v465_v53, %v454_v44  ;;  %v475_v3 = vmul.f32 %v465_v53, %v455_v12 }
 0x2e8   :  { %v446_v4 = vsub.f32 1.5, %v445_v63 }
 0x2e9   :  { %v492_v6 = vadd.f32 %v485_v13, %v472_v0  ;;  %v493_v7 = vadd.f32 %v485_v13, %v473_v1  ;;  %v494_v9 = vadd.f32 %v485_v13, %v474_v2  ;;  %v495_v11 = vadd.f32 %v485_v13, %v475_v3 }
 0x2ea   :  { %v447_v10 = vmul.f32 %v615_v57, %v446_v4 }
 0x2eb   :  { %500 = vst [vmem:[%s876_s4] sm:$0xff] %v492_v6 }
 0x2ec   :  { %v451_v14 = vsel %vm450_vm4, %v615_v57, %v447_v10  ;;  %501 = vst [vmem:[%s876_s4 + $0x8] sm:$0xff] %v493_v7 }
 0x2ed   :  { %547 = vst [vmem:[%s876_s4 + $0x20] sm:$0xff] %v494_v9  ;;  %v456_v16 = vmul.f32 %v451_v14, %v822_v33  ;;  %v457_v17 = vmul.f32 %v451_v14, %v824_v34  ;;  %v458_v18 = vmul.f32 %v451_v14, %v826_v36  ;;  %v459_v19 = vmul.f32 %v451_v14, %v828_v37 }
 0x2ee   :  { %548 = vst [vmem:[%s876_s4 + $0x28] sm:$0xff] %v495_v11 }
 0x2ef   :  { %v476_v20 = vmul.f32 %v470_v15, %v456_v16  ;;  %v477_v22 = vmul.f32 %v470_v15, %v457_v17  ;;  %v478_v23 = vmul.f32 %v470_v15, %v458_v18  ;;  %v479_v24 = vmul.f32 %v470_v15, %v459_v19 }
 0x2f1   :  { %v496_v26 = vadd.f32 %v490_v25, %v476_v20  ;;  %v497_v27 = vadd.f32 %v490_v25, %v477_v22  ;;  %v498_v29 = vadd.f32 %v490_v25, %v478_v23  ;;  %v499_v30 = vadd.f32 %v490_v25, %v479_v24 }
 0x2f3   :  { %502 = vst [vmem:[%s876_s4 + $0x10] sm:$0xff] %v496_v26 }
 0x2f4   :  { %503 = vst [vmem:[%s876_s4 + $0x18] sm:$0xff] %v497_v27 }
 0x2f5   :  { %549 = vst [vmem:[%s876_s4 + $0x30] sm:$0xff] %v498_v29 }
 0x2f6   :  { %550 = vst [vmem:[%s876_s4 + $0x38] sm:$0xff] %v499_v30 }

</bundles_post_ra>
